<compile_context>
chip_gen: v5e
topology: v5e:2x2
jax: 0.10.0
libtpu: 0.0.40
codegen_flags: <defaults>
</compile_context>

<pallas_src>
import jax
import jax.numpy as jnp
from jax import lax
from jax.experimental import pallas as pl
from jax.experimental.pallas import tpu as pltpu

D_IN, H1, H2, N_OUT = 32, 64, 64, 16
DEFAULT_TB = 1024        # batch rows per grid step (HBM<->VMEM DMA tile)
SUB_ROWS = 256           # rows per inner compute chunk (bounds live ranges)


def _round_up(n, m):
    return ((n + m - 1) // m) * m


def mlp_kernel(x_ref, w1_ref, b1_ref, w2_ref, b2_ref, w3_ref, b3_ref, o_ref):
    tb = x_ref.shape[0]
    sub = SUB_ROWS if (tb > SUB_ROWS and tb % SUB_ROWS == 0) else tb
    n_sub = tb // sub

    # Weights are VMEM-resident across the whole grid; pull to vregs once/step.
    w1 = w1_ref[...]                              # bf16 (32, 64)
    w2 = w2_ref[...]                              # bf16 (64, 64)
    w3 = w3_ref[...]                              # bf16 (64, 16)
    b1 = b1_ref[...].astype(jnp.float32)          # f32  (1, 64)
    b2 = b2_ref[...].astype(jnp.float32)          # f32  (1, 64)
    b3 = b3_ref[...].astype(jnp.float32)          # f32  (1, 16)

    def body(s, carry):
        r = s * sub
        if not isinstance(r, int):
            r = pl.multiple_of(r, sub)

        # Flatten is a no-op: rows already arrive as (sub, 32).
        x = x_ref[pl.ds(r, sub), :].astype(jnp.bfloat16)

        # Linear(32, 64) + ReLU    (bf16 MXU operands, f32 accumulate)
        h1 = jnp.dot(x, w1, preferred_element_type=jnp.float32) + b1
        h1 = jnp.maximum(h1, 0.0)

        # Dropout (eval mode) -> identity.

        # Linear(64, 64) + Tanh
        h2 = jnp.dot(h1.astype(jnp.bfloat16), w2,
                     preferred_element_type=jnp.float32) + b2
        h2 = jnp.tanh(h2)

        # Linear(64, 16) + Softmax(dim=1), max-stabilized
        logits = jnp.dot(h2.astype(jnp.bfloat16), w3,
                         preferred_element_type=jnp.float32) + b3
        m = jnp.max(logits, axis=1, keepdims=True)
        e = jnp.exp(logits - m)
        denom = jnp.sum(e, axis=1, keepdims=True)
        probs = e * pl.reciprocal(denom, approx=True)

        o_ref[pl.ds(r, sub), :] = probs.astype(o_ref.dtype)
        return carry

    if n_sub == 1:
        body(0, 0)
    else:
        lax.fori_loop(0, n_sub, body, 0, unroll=True)


def custom_model_forward(x, params, *, tile_rows=DEFAULT_TB):
    """x: (B, 32). params: bf16 (in,out) weights, f32 (1,out) biases."""
    w1, b1 = params["w1"], params["b1"]
    w2, b2 = params["w2"], params["b2"]
    w3, b3 = params["w3"], params["b3"]
    B = x.shape[0]

    # Pick the batch tile: a single tile for small B, else `tile_rows` rows.
    b8 = _round_up(max(B, 1), 8)
    tb = b8 if b8 <= tile_rows else _round_up(tile_rows, SUB_ROWS)
    b_pad = _round_up(B, tb)
    if b_pad != B:
        x = jnp.pad(x, ((0, b_pad - B), (0, 0)))
    nb = b_pad // tb

    flops = 2 * b_pad * (D_IN * H1 + H1 * H2 + H2 * N_OUT)
    transcendentals = b_pad * (H2 + N_OUT + 1)          # tanh + exp + recip
    bytes_accessed = (x.size * x.dtype.itemsize
                      + sum(int(p.size) * p.dtype.itemsize
                            for p in (w1, b1, w2, b2, w3, b3))
                      + b_pad * N_OUT * 4)

    def resident(arr):
        # Constant block index across the grid -> stays in VMEM, fetched once.
        return pl.BlockSpec(arr.shape, lambda i: (0, 0))

    out = pl.pallas_call(
        mlp_kernel,
        out_shape=jax.ShapeDtypeStruct((b_pad, N_OUT), jnp.float32),
        grid=(nb,),
        in_specs=[
            pl.BlockSpec((tb, D_IN), lambda i: (i, 0)),
            resident(w1), resident(b1),
            resident(w2), resident(b2),
            resident(w3), resident(b3),
        ],
        out_specs=pl.BlockSpec((tb, N_OUT), lambda i: (i, 0)),
        compiler_params=pltpu.CompilerParams(
            dimension_semantics=("parallel",)),
        cost_estimate=pl.CostEstimate(
            flops=flops,
            transcendentals=transcendentals,
            bytes_accessed=bytes_accessed),
    )(x, w1, b1, w2, b2, w3, b3)

    return out[:B]


def init_params(key, d_in=D_IN, h1=H1, h2=H2, n_out=N_OUT):
    """PyTorch-Linear-style uniform init; weights stored (in, out) in bf16."""
    ks = jax.random.split(key, 6)

    def linear(kw, kb, fan_in, fan_out):
        bound = 1.0 / jnp.sqrt(jnp.float32(fan_in))
        w = jax.random.uniform(kw, (fan_in, fan_out), jnp.float32, -bound, bound)
        b = jax.random.uniform(kb, (1, fan_out), jnp.float32, -bound, bound)
        return w.astype(jnp.bfloat16), b        # bf16 MXU operand, f32 bias

    w1, b1 = linear(ks[0], ks[1], d_in, h1)
    w2, b2 = linear(ks[2], ks[3], h1, h2)
    w3, b3 = linear(ks[4], ks[5], h2, n_out)
    return {"w1": w1, "b1": b1, "w2": w2, "b2": b2, "w3": w3, "b3": b3}


if __name__ == "__main__":
    key = jax.random.PRNGKey(0)
    k_x, k_p = jax.random.split(key)

    B = 8
    x = jax.random.normal(k_x, (B, D_IN), dtype=jnp.float32)
    params = init_params(k_p)

    out = custom_model_forward(x, params)
    out = jax.block_until_ready(out)

    assert out.shape == (B, N_OUT)
    assert bool(jnp.all(jnp.isfinite(out)))
    row_sums = jnp.sum(out, axis=1)
    assert bool(jnp.all(jnp.abs(row_sums - 1.0) < 5e-3))   # softmax rows sum to 1

    print("KERNEL_OK")
</pallas_src>

<mosaic_0001>
module attributes {stable_mosaic.version = 11 : i64} {
  func.func @mlp_kernel(%arg0: i32, %arg1: memref<8x32xf32, #tpu.memory_space<vmem>>, %arg2: memref<32x64xbf16, #tpu.memory_space<vmem>>, %arg3: memref<1x64xf32, #tpu.memory_space<vmem>>, %arg4: memref<64x64xbf16, #tpu.memory_space<vmem>>, %arg5: memref<1x64xf32, #tpu.memory_space<vmem>>, %arg6: memref<64x16xbf16, #tpu.memory_space<vmem>>, %arg7: memref<1x16xf32, #tpu.memory_space<vmem>>, %arg8: memref<8x16xf32, #tpu.memory_space<vmem>>) attributes {dimension_semantics = [#tpu.dimension_semantics<parallel>], iteration_bounds = array<i64: 1>, scalar_prefetch = 0 : i64, scratch_operands = 0 : i64, tpu.core_type = #tpu.core_type<tc>, window_params = [{transform_indices = @transform_0, window_bounds = array<i64: 8, 32>}, {pipeline_mode = #tpu.pipeline_mode<synchronous>, transform_indices = @transform_1, window_bounds = array<i64: 32, 64>}, {pipeline_mode = #tpu.pipeline_mode<synchronous>, transform_indices = @transform_2, window_bounds = array<i64: 1, 64>}, {pipeline_mode = #tpu.pipeline_mode<synchronous>, transform_indices = @transform_3, window_bounds = array<i64: 64, 64>}, {pipeline_mode = #tpu.pipeline_mode<synchronous>, transform_indices = @transform_4, window_bounds = array<i64: 1, 64>}, {pipeline_mode = #tpu.pipeline_mode<synchronous>, transform_indices = @transform_5, window_bounds = array<i64: 64, 16>}, {pipeline_mode = #tpu.pipeline_mode<synchronous>, transform_indices = @transform_6, window_bounds = array<i64: 1, 16>}, {transform_indices = @transform_7, window_bounds = array<i64: 8, 16>}]} {
    %c0 = arith.constant 0 : index
    %c0_0 = arith.constant 0 : index
    %0 = vector.load %arg2[%c0, %c0_0] : memref<32x64xbf16, #tpu.memory_space<vmem>>, vector<32x64xbf16>
    %c0_1 = arith.constant 0 : index
    %c0_2 = arith.constant 0 : index
    %1 = vector.load %arg4[%c0_1, %c0_2] : memref<64x64xbf16, #tpu.memory_space<vmem>>, vector<64x64xbf16>
    %c0_3 = arith.constant 0 : index
    %c0_4 = arith.constant 0 : index
    %2 = vector.load %arg6[%c0_3, %c0_4] : memref<64x16xbf16, #tpu.memory_space<vmem>>, vector<64x16xbf16>
    %c0_5 = arith.constant 0 : index
    %c0_6 = arith.constant 0 : index
    %3 = vector.load %arg3[%c0_5, %c0_6] : memref<1x64xf32, #tpu.memory_space<vmem>>, vector<1x64xf32>
    %c0_7 = arith.constant 0 : index
    %c0_8 = arith.constant 0 : index
    %4 = vector.load %arg5[%c0_7, %c0_8] : memref<1x64xf32, #tpu.memory_space<vmem>>, vector<1x64xf32>
    %c0_9 = arith.constant 0 : index
    %c0_10 = arith.constant 0 : index
    %5 = vector.load %arg7[%c0_9, %c0_10] : memref<1x16xf32, #tpu.memory_space<vmem>>, vector<1x16xf32>
    %c0_11 = arith.constant 0 : index
    %c0_12 = arith.constant 0 : index
    %6 = vector.load %arg1[%c0_11, %c0_12] : memref<8x32xf32, #tpu.memory_space<vmem>>, vector<8x32xf32>
    %7 = arith.truncf %6 : vector<8x32xf32> to vector<8x32xbf16>
    %cst = arith.constant dense<0.000000e+00> : vector<8x64xf32>
    %8 = tpu.matmul %7, %0, %cst {dimension_numbers = #tpu.dot_dimension_numbers<[1], [0], [0], [1], [0, 0, 1, 1], [], []>} : vector<8x32xbf16>, vector<32x64xbf16>, vector<8x64xf32> -> vector<8x64xf32>
    %9 = vector.broadcast %3 : vector<1x64xf32> to vector<8x64xf32>
    %10 = arith.addf %8, %9 : vector<8x64xf32>
    %cst_13 = arith.constant 0.000000e+00 : f32
    %11 = vector.broadcast %cst_13 : f32 to vector<8x64xf32>
    %12 = arith.maximumf %10, %11 : vector<8x64xf32>
    %13 = arith.truncf %12 : vector<8x64xf32> to vector<8x64xbf16>
    %cst_14 = arith.constant dense<0.000000e+00> : vector<8x64xf32>
    %14 = tpu.matmul %13, %1, %cst_14 {dimension_numbers = #tpu.dot_dimension_numbers<[1], [0], [0], [1], [0, 0, 1, 1], [], []>} : vector<8x64xbf16>, vector<64x64xbf16>, vector<8x64xf32> -> vector<8x64xf32>
    %15 = vector.broadcast %4 : vector<1x64xf32> to vector<8x64xf32>
    %16 = arith.addf %14, %15 : vector<8x64xf32>
    %17 = math.tanh %16 : vector<8x64xf32>
    %18 = arith.truncf %17 : vector<8x64xf32> to vector<8x64xbf16>
    %cst_15 = arith.constant dense<0.000000e+00> : vector<8x16xf32>
    %19 = tpu.matmul %18, %2, %cst_15 {dimension_numbers = #tpu.dot_dimension_numbers<[1], [0], [0], [1], [0, 0, 1, 1], [], []>} : vector<8x64xbf16>, vector<64x16xbf16>, vector<8x16xf32> -> vector<8x16xf32>
    %20 = vector.broadcast %5 : vector<1x16xf32> to vector<8x16xf32>
    %21 = arith.addf %19, %20 : vector<8x16xf32>
    %cst_16 = arith.constant dense<0xFF800000> : vector<8xf32>
    %22 = vector.multi_reduction <maximumf>, %21, %cst_16 [1] : vector<8x16xf32> to vector<8xf32>
    %23 = vector.shape_cast %22 : vector<8xf32> to vector<8x1xf32>
    %24 = vector.broadcast %23 : vector<8x1xf32> to vector<8x16xf32>
    %25 = arith.subf %21, %24 : vector<8x16xf32>
    %26 = math.exp %25 : vector<8x16xf32>
    %cst_17 = arith.constant dense<0.000000e+00> : vector<8xf32>
    %27 = vector.multi_reduction <add>, %26, %cst_17 [1] : vector<8x16xf32> to vector<8xf32>
    %28 = vector.shape_cast %27 : vector<8xf32> to vector<8x1xf32>
    %29 = tpu.reciprocal %28 {approx = true} : vector<8x1xf32> -> vector<8x1xf32>
    %30 = vector.broadcast %29 : vector<8x1xf32> to vector<8x16xf32>
    %31 = arith.mulf %26, %30 : vector<8x16xf32>
    %c0_18 = arith.constant 0 : index
    %c0_19 = arith.constant 0 : index
    %32 = vector.load %arg8[%c0_18, %c0_19] : memref<8x16xf32, #tpu.memory_space<vmem>>, vector<8x16xf32>
    tpu.vector_store %arg8[%c0_18, %c0_19], %31 {strides = array<i32>} : memref<8x16xf32, #tpu.memory_space<vmem>>, vector<8x16xf32>,
    return
  }
  func.func @transform_0(%arg0: i32) -> (i32, i32) {
    %c0_i32 = arith.constant 0 : i32
    %c0_i32_0 = arith.constant 0 : i32
    return %arg0, %c0_i32 : i32, i32
  }
  func.func @transform_1(%arg0: i32) -> (i32, i32) {
    %c0_i32 = arith.constant 0 : i32
    %c0_i32_0 = arith.constant 0 : i32
    %c0_i32_1 = arith.constant 0 : i32
    return %c0_i32, %c0_i32_0 : i32, i32
  }
  func.func @transform_2(%arg0: i32) -> (i32, i32) {
    %c0_i32 = arith.constant 0 : i32
    %c0_i32_0 = arith.constant 0 : i32
    %c0_i32_1 = arith.constant 0 : i32
    return %c0_i32, %c0_i32_0 : i32, i32
  }
  func.func @transform_3(%arg0: i32) -> (i32, i32) {
    %c0_i32 = arith.constant 0 : i32
    %c0_i32_0 = arith.constant 0 : i32
    %c0_i32_1 = arith.constant 0 : i32
    return %c0_i32, %c0_i32_0 : i32, i32
  }
  func.func @transform_4(%arg0: i32) -> (i32, i32) {
    %c0_i32 = arith.constant 0 : i32
    %c0_i32_0 = arith.constant 0 : i32
    %c0_i32_1 = arith.constant 0 : i32
    return %c0_i32, %c0_i32_0 : i32, i32
  }
  func.func @transform_5(%arg0: i32) -> (i32, i32) {
    %c0_i32 = arith.constant 0 : i32
    %c0_i32_0 = arith.constant 0 : i32
    %c0_i32_1 = arith.constant 0 : i32
    return %c0_i32, %c0_i32_0 : i32, i32
  }
  func.func @transform_6(%arg0: i32) -> (i32, i32) {
    %c0_i32 = arith.constant 0 : i32
    %c0_i32_0 = arith.constant 0 : i32
    %c0_i32_1 = arith.constant 0 : i32
    return %c0_i32, %c0_i32_0 : i32, i32
  }
  func.func @transform_7(%arg0: i32) -> (i32, i32) {
    %c0_i32 = arith.constant 0 : i32
    %c0_i32_0 = arith.constant 0 : i32
    return %arg0, %c0_i32 : i32, i32
  }
}

</mosaic_0001>

<bundles_post_ra>
// kernel: tpu_custom_call.1
= control target key start
LH: loop header
LB: loop body
LE: loop exit
PB: predicated region body
PF: predicated region fallthrough
CT: control target
= control target key end

     0   :  { %12 = vsyncpa [#allocation3], 0  ;;  %s431_s0 = inlined_call_operand.vmem [shape: f32[8,32], index: 0, kind: input, shape index: {}]   ;;  %s432_s1 = inlined_call_operand.hbm [shape: bf16[32,64], index: 1, kind: input, shape index: {}]   ;;  %s433_s2 = inlined_call_operand.vmem [shape: f32[1,64], index: 2, kind: input, shape index: {}]   ;;  %s434_s3 = inlined_call_operand.vmem [shape: bf16[64,64], index: 3, kind: input, shape index: {}]   ;;  %s435_s4 = inlined_call_operand.vmem [shape: f32[1,64], index: 4, kind: input, shape index: {}]   ;;  %s436_s5 = inlined_call_operand.vmem [shape: bf16[64,16], index: 5, kind: input, shape index: {}]   ;;  %s437_s6 = inlined_call_operand.vmem [shape: f32[1,16], index: 6, kind: input, shape index: {}]   ;;  %s438_s7 = inlined_call_operand.hbm [shape: f32[8,16], index: 7, kind: output, shape index: {}]  }
   0x1   :  { %13 = vsyncpa [#allocation4], 0  ;;  %s20_s26 = sshll.u32 %s432_s1, 4  ;;  %s340_s27 = smov [#allocation2]   ;;  %s21_s26 = int_to_ptr.hbm [resolvable:$true] %s20_s26 }
   0x2   :  { %s22_s28 = sshll.u32 %s340_s27, 4  ;;  %s341_s29 = smov 64   ;;  %s23_s28 = int_to_ptr.vmem [resolvable:$true] %s22_s28 }
   0x3   :  { %s342_s30 = smov 4  }
   0x4   :  { %28 = dma.hbm_to_vmem [thread:$0]  %s21_s26, 256, %s23_s28, [#allocation3], %s341_s29, %s341_s29, %s342_s30  }
   0x5   :  { %336 = dma.done.wait [#allocation3], 256  }
   0x6   :  { %337 = vsyncadd [#allocation3], 4294967040  ;;  %v266_v0 = vld [vmem:[#allocation2 + $0x8] sm:$0xff]  ;;  %v265_v1 = vld [vmem:[#allocation2] sm:$0xff]  ;;  %vm84_vm0 = vcmask 261120   ;;  %vm130_vm1 = vcmask 523264  }
   0x7   :  { %v270_v2 = vld [vmem:[%s434_s3 + $0x18] sm:$0xff]  ;;  %94 = vmatpush.bf16.msra.mxu0 %v266_v0  ;;  %v67_v3 = vld [vmem:[%s431_s0] sm:$0xff]  ;;  %v269_v4 = vld [vmem:[%s434_s3 + $0x10] sm:$0xff]  ;;  %vm192_vm2 = vcmask 130048   ;;  %s212_s29 = sshll.u32 %s438_s7, 4  ;;  %s213_s29 = int_to_ptr.hbm [resolvable:$true] %s212_s29 }
   0x8   :  { %138 = vmatpush.bf16.msra.mxu1 %v270_v2  ;;  %v68_v5 = vpack.c.bf16 %v67_v3, %v67_v3  ;;  %v268_v6 = vld [vmem:[%s434_s3 + $0x8] sm:$0xff]  ;;  %v267_v7 = vld [vmem:[%s434_s3] sm:$0xff]  ;;  %v274_v8 = vld [vmem:[%s436_s5 + $0x18] sm:$0xff] }
   0x9   :  { %183 = vmatpush.bf16.msra.mxu2 %v274_v8  ;;  %v279_v9 = vld [vmem:[%s433_s2] ss:$0 sm:$0xff]  ;;  %v273_v15 = vld [vmem:[%s436_s5 + $0x10] sm:$0xff]  ;;  %v272_v16 = vld [vmem:[%s436_s5 + $0x8] sm:$0xff] }
   0xa   :  { %v271_v17 = vld [vmem:[%s436_s5] sm:$0xff] }
   0xb   :  { %95 = vmatpush.bf16.msra.mxu0 %v265_v1  ;;  %v280_v18 = vld [vmem:[%s435_s4] ss:$0 sm:$0xff]  ;;  %s343_s4 = smov [#allocation5]  }
   0xc   :  { %139 = vmatpush.bf16.msra.mxu1 %v269_v4  ;;  %v281_v24 = vld [vmem:[%s437_s6] ss:$0 sm:$0xff]  ;;  %s210_s5 = sshll.u32 %s343_s4, 4  ;;  %s211_s5 = int_to_ptr.vmem [resolvable:$true] %s210_s5 }
   0xd   :  { %184 = vmatpush.bf16.msra.mxu2 %v273_v15 }
   0xe   :  { %230 = vmatmul.msk.bf16.vlgmr.msra.gmra.mxu0 %vm84_vm0, %v68_v5 }
  0x10   :  { %140 = vmatpush.bf16.msra.mxu1 %v268_v6 }
  0x11   :  { %185 = vmatpush.bf16.msra.mxu2 %v272_v16 }
  0x14   :  { %141 = vmatpush.bf16.msra.mxu1 %v267_v7 }
  0x15   :  { %186 = vmatpush.bf16.msra.mxu2 %v271_v17 }
  0x8b   :  { %v97_v10 = vpop.f32.mrf.mxu0 }
  0x8c   :  { %v98_v11 = vadd.f32 %v279_v9, %v97_v10 }
  0x8e   :  { %v101_v12 = vmax.f32 %v98_v11, 0.0 }
  0x90   :  { %v102_v13 = vpack.c.bf16 %v101_v12, %v101_v12 }
  0x92   :  { %247 = vmatmul.msk.bf16.vlgmr.msra.gmra.mxu1 %vm130_vm1, %v102_v13 }
  0x93   :  { %v99_v14 = vpop.f32.mrf.mxu0 }
 0x10f   :  { %v143_v19 = vpop.f32.mrf.mxu1 }
 0x110   :  { %v144_v20 = vadd.f32 %v280_v18, %v143_v19 }
 0x112   :  { %282 = vtanh.f32 %v144_v20 }
 0x117   :  { %v145_v21 = vpop.f32.mrf.mxu1 }
 0x118   :  { %v283_v22 = vpop.eup %282 }
 0x119   :  { %v148_v23 = vpack.c.bf16 %v283_v22, %v283_v22 }
 0x11b   :  { %264 = vmatmul.msk.bf16.vlgmr.msra.gmra.mxu2 %vm130_vm1, %v148_v23 }
 0x19e   :  { %v188_v25 = vpop.f32.mrf.mxu2 }
 0x19f   :  { %v189_v26 = vadd.f32 %v281_v24, %v188_v25 }
 0x1a1   :  { %v193_v27 = vsel %vm192_vm2, %v189_v26, -inf }
 0x1a2   :  { %194 = vmax.xlane.f32.xlu0 %v193_v27 }
 0x1a6   :  { %v190_v28 = vpop.f32.mrf.mxu2 }
 0x215   :  { %v195_v29 = vpop.xlane.xlu0 %194 }
 0x216   :  { %v196_v30 = vsub.f32 %v189_v26, %v195_v29 }
 0x218   :  { %v197_v31 = vmul.f32 1.442695, %v196_v30 }
 0x21a   :  { %284 = vpow2.f32 %v197_v31 }
 0x220   :  { %v285_v32 = vpop.eup %284 }
 0x221   :  { %v199_v33 = vsel %vm192_vm2, %v285_v32, 0.0 }
 0x222   :  { %200 = vadd.xlane.f32.xlu0 %v199_v33 }
 0x295   :  { %v201_v34 = vpop.xlane.xlu0 %200 }
 0x296   :  { %286 = vrcp.f32 %v201_v34 }
 0x29c   :  { %v287_v35 = vpop.eup %286 }
 0x29d   :  { %v203_v36 = vmul.f32 %v287_v35, %v285_v32 }
 0x29f   :  { %204 = vst.msk [vmem:[#allocation5] sm:$0xff] %vm192_vm2, %v203_v36 }
 0x2a0   :  { %215 = dma.vmem_to_hbm [thread:$0]  %s211_s5, 128, %s213_s29, [#allocation4]  }
 0x2a1   :  { %338 = dma.done.wait [#allocation4], 128  }
 0x2a2   :  { %339 = vsyncadd [#allocation4], 4294967168 }
 0x2a3   :  { %220 = vsyncpa [#allocation3], 1 }
 0x2a4   :  { %221 = vsyncpa [#allocation4], 1 }

</bundles_post_ra>
